<compile_context>
chip_gen: v7x
topology: tpu7x:2x2x1
jax: 0.10.0
libtpu: 0.0.40
codegen_flags: <defaults>
</compile_context>

<pallas_src>
import functools

import jax
import jax.numpy as jnp
from jax.experimental import pallas as pl
from jax.experimental.pallas import tpu as pltpu


def _sa_kernel(v_mapping, q_dim, k_dim, v_dim, tq,
               x_ref, wqkv_ref, bqkv_ref, wo_ref, bo_ref, gamma_ref,
               out_ref, attn_ref, q_scr, k_scr, *maybe_v):
    """Grid = (batch blocks, query-row tiles).  Scratch carries Q/K/V per batch block."""
    v_scr = maybe_v[0] if v_mapping else None
    qi = pl.program_id(1)
    gamma = gamma_ref[0]                       # scalar from SMEM

    bt, n, c = x_ref.shape

    # ---- once per batch block: fused Q|K|V projection, cached in VMEM scratch ----
    @pl.when(qi == 0)
    def _():
        x = x_ref[...]                                                 # (BT, N, C)
        x2 = x.reshape(bt * n, c)                                      # 2D matmul for MXU
        qkv2 = jnp.dot(x2, wqkv_ref[...],
                       preferred_element_type=jnp.float32)             # (BT*N, Dq+Dk[+Dv])
        qkv = qkv2.reshape(bt, n, -1) + bqkv_ref[...][:, None, :]
        q_scr[...] = qkv[:, :, :q_dim]
        k_scr[...] = qkv[:, :, q_dim:q_dim + k_dim]
        if v_mapping:
            v_scr[...] = qkv[:, :, q_dim + k_dim:]

    # ---- this query-row tile ----
    row0 = pl.multiple_of(qi * tq, tq)
    q = q_scr[:, pl.ds(row0, tq), :]                                   # (BT, TQ, Dq)
    k = k_scr[...]                                                     # (BT, N,  Dk)

    # energy[b, i, j] = <q_i, k_j>
    energy = jnp.einsum("bqd,bkd->bqk", q, k,
                        preferred_element_type=jnp.float32)            # (BT, TQ, N)

    # numerically stable softmax over the full key axis (all keys resident)
    m = jnp.max(energy, axis=-1, keepdims=True)
    e = jnp.exp(energy - m)
    denom = jnp.sum(e, axis=-1, keepdims=True)
    attn = e * (1.0 / denom)                                           # row reciprocal + mul
    attn_ref[...] = attn

    if v_mapping:
        v = v_scr[...]                                                 # (BT, N, Dv)
        ov = jnp.einsum("bqk,bkd->bqd", attn, v,
                        preferred_element_type=jnp.float32)            # (BT, TQ, Dv)
        ov2 = ov.reshape(bt * tq, v_dim)
        o2 = jnp.dot(ov2, wo_ref[...],
                     preferred_element_type=jnp.float32)               # (BT*TQ, C)
        o = o2.reshape(bt, tq, c) + bo_ref[...][:, None, :]
    else:
        # value = x itself
        o = jnp.einsum("bqk,bkc->bqc", attn, x_ref[...],
                       preferred_element_type=jnp.float32)             # (BT, TQ, C)

    x_rows = x_ref[:, pl.ds(row0, tq), :]                              # (BT, TQ, C)
    out_ref[...] = gamma * o + x_rows


def _pick_tiles(B, N, attn_budget_bytes=2 * 1024 * 1024):
    """Pick (BT, TQ): BT batch elems per step (amortize step overhead at tiny shapes),
    TQ query-row tile so the per-step attn block stays O(TQ*N) within budget."""
    bt = 1
    for cand in range(B, 0, -1):
        if B % cand == 0 and cand * N * N * 4 <= attn_budget_bytes:
            bt = cand
            break
    if bt * N * N * 4 <= attn_budget_bytes:
        tq = N
    else:
        tq = N
        for cand in range(min(N, 512), 7, -1):
            if cand % 8 == 0 and N % cand == 0:
                tq = cand
                break
    return bt, tq


def self_attention_pallas(x, params, v_mapping=True):
    """x: (B, C, W, H) float32 (NCHW, like the torch module).
    Returns (out (B, C, W, H), attention (B, N, N)) with N = W*H."""
    B, C, W, H = x.shape
    N = W * H

    # glue: NCHW -> (B, N, C)
    x_t = jnp.transpose(x.reshape(B, C, N), (0, 2, 1)).astype(jnp.float32)

    wq_t = jnp.transpose(params["wq"]).astype(jnp.float32)   # (C, q_dim)
    wk_t = jnp.transpose(params["wk"]).astype(jnp.float32)   # (C, k_dim)
    wv_t = jnp.transpose(params["wv"]).astype(jnp.float32)   # (C, v_dim)
    wo_t = jnp.transpose(params["wo"]).astype(jnp.float32)   # (v_dim, C)
    q_dim, k_dim, v_dim = wq_t.shape[1], wk_t.shape[1], wv_t.shape[1]

    # fused Q|K|V weight / bias (single MXU push, wider result lanes)
    if v_mapping:
        wqkv = jnp.concatenate([wq_t, wk_t, wv_t], axis=1)
        bqkv = jnp.concatenate(
            [params["bq"], params["bk"], params["bv"]]).reshape(1, -1)
    else:
        wqkv = jnp.concatenate([wq_t, wk_t], axis=1)
        bqkv = jnp.concatenate([params["bq"], params["bk"]]).reshape(1, -1)
    wqkv = wqkv.astype(jnp.float32)
    bqkv = bqkv.astype(jnp.float32)
    dtot = wqkv.shape[1]

    bo = params["bo"].reshape(1, -1).astype(jnp.float32)
    gamma = params["gamma"].reshape(1,).astype(jnp.float32)

    BT, TQ = _pick_tiles(B, N)
    grid = (B // BT, N // TQ)

    kernel = functools.partial(_sa_kernel, v_mapping, q_dim, k_dim, v_dim, TQ)

    # advisory cost estimate (kernel is HBM-bound on the attn write)
    flops = 2 * B * N * C * dtot + 2 * B * N * N * q_dim
    if v_mapping:
        flops += 2 * B * N * N * v_dim + 2 * B * N * v_dim * C
    else:
        flops += 2 * B * N * N * C
    bytes_accessed = 4 * (2 * B * N * C + B * N * N
                          + C * dtot + v_dim * C + dtot + C + 1)
    cost = pl.CostEstimate(flops=int(flops), transcendentals=int(B * N * N),
                           bytes_accessed=int(bytes_accessed))

    scratch = [pltpu.VMEM((BT, N, q_dim), jnp.float32),
               pltpu.VMEM((BT, N, k_dim), jnp.float32)]
    if v_mapping:
        scratch.append(pltpu.VMEM((BT, N, v_dim), jnp.float32))

    out_t, attn = pl.pallas_call(
        kernel,
        out_shape=(
            jax.ShapeDtypeStruct((B, N, C), jnp.float32),
            jax.ShapeDtypeStruct((B, N, N), jnp.float32),
        ),
        grid_spec=pltpu.PrefetchScalarGridSpec(
            num_scalar_prefetch=0,
            grid=grid,
            in_specs=[
                pl.BlockSpec((BT, N, C), lambda b, q: (b, 0, 0)),    # x (full rows per batch block)
                pl.BlockSpec((C, dtot), lambda b, q: (0, 0)),        # fused Wq|Wk|Wv
                pl.BlockSpec((1, dtot), lambda b, q: (0, 0)),        # fused bq|bk|bv
                pl.BlockSpec((v_dim, C), lambda b, q: (0, 0)),       # Wo
                pl.BlockSpec((1, C), lambda b, q: (0, 0)),           # bo
                pl.BlockSpec(memory_space=pltpu.MemorySpace.SMEM),   # gamma (scalar in SMEM)
            ],
            out_specs=[
                pl.BlockSpec((BT, TQ, C), lambda b, q: (b, q, 0)),
                pl.BlockSpec((BT, TQ, N), lambda b, q: (b, q, 0)),
            ],
            scratch_shapes=scratch,
        ),
        compiler_params=pltpu.CompilerParams(
            dimension_semantics=("parallel", "arbitrary"),
            vmem_limit_bytes=48 * 1024 * 1024,
        ),
        cost_estimate=cost,
    )(x_t, wqkv, bqkv, wo_t, bo, gamma)

    # glue: (B, N, C) -> NCHW
    out = jnp.transpose(out_t, (0, 2, 1)).reshape(B, C, W, H)
    return out, attn


# ---- pure-JAX reference (mirrors the torch forward exactly) ----------------
def self_attention_ref(x, params, v_mapping=True):
    B, C, W, H = x.shape
    N = W * H

    def conv1x1(x_, w, b):
        return jnp.einsum("bcwh,oc->bowh", x_, w) + b[None, :, None, None]

    q = conv1x1(x, params["wq"], params["bq"]).reshape(B, -1, N).transpose(0, 2, 1)
    k = conv1x1(x, params["wk"], params["bk"]).reshape(B, -1, N)
    energy = jnp.einsum("bnd,bdm->bnm", q, k)
    attn = jax.nn.softmax(energy, axis=-1)
    if v_mapping:
        v = conv1x1(x, params["wv"], params["bv"]).reshape(B, -1, N)
    else:
        v = x.reshape(B, C, N)
    out = jnp.einsum("bdj,bij->bdi", v, attn)  # bmm(v, attn^T)
    if v_mapping:
        out = out.reshape(B, -1, W, H)
        out = conv1x1(out, params["wo"], params["bo"])
    else:
        out = out.reshape(B, C, W, H)
    out = params["gamma"][0] * out + x
    return out, attn


if __name__ == "__main__":
    # Shapes implied by the module: in_dim=C, q_dim=k_dim (required by bmm), v_dim.
    B, C, W, H = 2, 8, 8, 8
    q_dim = k_dim = 8
    v_dim = 8

    key = jax.random.PRNGKey(0)
    ks = jax.random.split(key, 10)
    params = {
        # conv weights are (out, in) since kernel_size=1
        "wq": 0.1 * jax.random.normal(ks[0], (q_dim, C), jnp.float32),
        "bq": 0.1 * jax.random.normal(ks[1], (q_dim,), jnp.float32),
        "wk": 0.1 * jax.random.normal(ks[2], (k_dim, C), jnp.float32),
        "bk": 0.1 * jax.random.normal(ks[3], (k_dim,), jnp.float32),
        "wv": 0.1 * jax.random.normal(ks[4], (v_dim, C), jnp.float32),
        "bv": 0.1 * jax.random.normal(ks[5], (v_dim,), jnp.float32),
        "wo": 0.1 * jax.random.normal(ks[6], (C, v_dim), jnp.float32),
        "bo": 0.1 * jax.random.normal(ks[7], (C,), jnp.float32),
        # module init is zeros(1); use a nonzero value so the residual path is exercised
        "gamma": jnp.full((1,), 0.5, jnp.float32),
    }
    x = jax.random.normal(ks[8], (B, C, W, H), jnp.float32)

    out, attn = self_attention_pallas(x, params, v_mapping=True)
    out = jax.block_until_ready(out)
    attn = jax.block_until_ready(attn)

    out_ref, attn_ref = self_attention_ref(x, params, v_mapping=True)
    assert jnp.allclose(out, out_ref, atol=1e-5, rtol=1e-5)
    assert jnp.allclose(attn, attn_ref, atol=1e-5, rtol=1e-5)

    # also exercise the v_mapping=False branch
    out2, attn2 = self_attention_pallas(x, params, v_mapping=False)
    out2 = jax.block_until_ready(out2)
    out2_ref, attn2_ref = self_attention_ref(x, params, v_mapping=False)
    assert jnp.allclose(out2, out2_ref, atol=1e-5, rtol=1e-5)
    assert jnp.allclose(attn2, attn2_ref, atol=1e-5, rtol=1e-5)

    print("KERNEL_OK")
</pallas_src>

<mosaic_0001>
module attributes {stable_mosaic.version = 11 : i64} {
  func.func @_sa_kernel(%arg0: i32, %arg1: i32, %arg2: memref<2x64x8xf32, #tpu.memory_space<vmem>>, %arg3: memref<8x24xf32, #tpu.memory_space<vmem>>, %arg4: memref<1x24xf32, #tpu.memory_space<vmem>>, %arg5: memref<8x8xf32, #tpu.memory_space<vmem>>, %arg6: memref<1x8xf32, #tpu.memory_space<vmem>>, %arg7: memref<1xf32, #tpu.memory_space<smem>>, %arg8: memref<2x64x8xf32, #tpu.memory_space<vmem>>, %arg9: memref<2x64x64xf32, #tpu.memory_space<vmem>>, %arg10: memref<2x64x8xf32, #tpu.memory_space<vmem>>, %arg11: memref<2x64x8xf32, #tpu.memory_space<vmem>>, %arg12: memref<2x64x8xf32, #tpu.memory_space<vmem>>) attributes {dimension_semantics = [#tpu.dimension_semantics<parallel>, #tpu.dimension_semantics<arbitrary>], iteration_bounds = array<i64: 1, 1>, scalar_prefetch = 0 : i64, scratch_operands = 3 : i64, tpu.core_type = #tpu.core_type<tc>, window_params = [{transform_indices = @transform_0, window_bounds = array<i64: 2, 64, 8>}, {pipeline_mode = #tpu.pipeline_mode<synchronous>, transform_indices = @transform_1, window_bounds = array<i64: 8, 24>}, {pipeline_mode = #tpu.pipeline_mode<synchronous>, transform_indices = @transform_2, window_bounds = array<i64: 1, 24>}, {pipeline_mode = #tpu.pipeline_mode<synchronous>, transform_indices = @transform_3, window_bounds = array<i64: 8, 8>}, {pipeline_mode = #tpu.pipeline_mode<synchronous>, transform_indices = @transform_4, window_bounds = array<i64: 1, 8>}, {transform_indices = @transform_5, window_bounds = array<i64: 1>}, {transform_indices = @transform_6, window_bounds = array<i64: 2, 64, 8>}, {transform_indices = @transform_7, window_bounds = array<i64: 2, 64, 64>}]} {
    %c0 = arith.constant 0 : index
    %0 = memref.load %arg7[%c0] : memref<1xf32, #tpu.memory_space<smem>>
    %c0_i32 = arith.constant 0 : i32
    %1 = arith.cmpi eq, %arg1, %c0_i32 : i32
    %2 = arith.extui %1 : i1 to i32
    %c0_i32_0 = arith.constant 0 : i32
    %3 = arith.cmpi ne, %2, %c0_i32_0 : i32
    scf.if %3 {
      %c0_26 = arith.constant 0 : index
      %c0_27 = arith.constant 0 : index
      %c0_28 = arith.constant 0 : index
      %38 = vector.load %arg2[%c0_26, %c0_27, %c0_28] : memref<2x64x8xf32, #tpu.memory_space<vmem>>, vector<2x64x8xf32>
      %39 = vector.shape_cast %38 : vector<2x64x8xf32> to vector<128x8xf32>
      %c0_29 = arith.constant 0 : index
      %c0_30 = arith.constant 0 : index
      %40 = vector.load %arg3[%c0_29, %c0_30] : memref<8x24xf32, #tpu.memory_space<vmem>>, vector<8x24xf32>
      %cst_31 = arith.constant dense<0.000000e+00> : vector<128x24xf32>
      %41 = tpu.matmul %39, %40, %cst_31 {dimension_numbers = #tpu.dot_dimension_numbers<[1], [0], [0], [1], [0, 0, 1, 1], [], []>} : vector<128x8xf32>, vector<8x24xf32>, vector<128x24xf32> -> vector<128x24xf32>
      %42 = vector.shape_cast %41 : vector<128x24xf32> to vector<2x64x24xf32>
      %c0_32 = arith.constant 0 : index
      %c0_33 = arith.constant 0 : index
      %43 = vector.load %arg4[%c0_32, %c0_33] : memref<1x24xf32, #tpu.memory_space<vmem>>, vector<1x24xf32>
      %44 = vector.shape_cast %43 : vector<1x24xf32> to vector<1x1x24xf32>
      %45 = vector.broadcast %44 : vector<1x1x24xf32> to vector<2x64x24xf32>
      %46 = arith.addf %42, %45 : vector<2x64x24xf32>
      %47 = vector.extract_strided_slice %46 {offsets = [0, 0, 0], sizes = [2, 64, 8], strides = [1, 1, 1]} : vector<2x64x24xf32> to vector<2x64x8xf32>
      %c0_34 = arith.constant 0 : index
      %c0_35 = arith.constant 0 : index
      %c0_36 = arith.constant 0 : index
      %48 = vector.load %arg10[%c0_34, %c0_35, %c0_36] : memref<2x64x8xf32, #tpu.memory_space<vmem>>, vector<2x64x8xf32>
      tpu.vector_store %arg10[%c0_34, %c0_35, %c0_36], %47 {strides = array<i32>} : memref<2x64x8xf32, #tpu.memory_space<vmem>>, vector<2x64x8xf32>,
      %49 = vector.extract_strided_slice %46 {offsets = [0, 0, 8], sizes = [2, 64, 8], strides = [1, 1, 1]} : vector<2x64x24xf32> to vector<2x64x8xf32>
      %c0_37 = arith.constant 0 : index
      %c0_38 = arith.constant 0 : index
      %c0_39 = arith.constant 0 : index
      %50 = vector.load %arg11[%c0_37, %c0_38, %c0_39] : memref<2x64x8xf32, #tpu.memory_space<vmem>>, vector<2x64x8xf32>
      tpu.vector_store %arg11[%c0_37, %c0_38, %c0_39], %49 {strides = array<i32>} : memref<2x64x8xf32, #tpu.memory_space<vmem>>, vector<2x64x8xf32>,
      %51 = vector.extract_strided_slice %46 {offsets = [0, 0, 16], sizes = [2, 64, 8], strides = [1, 1, 1]} : vector<2x64x24xf32> to vector<2x64x8xf32>
      %c0_40 = arith.constant 0 : index
      %c0_41 = arith.constant 0 : index
      %c0_42 = arith.constant 0 : index
      %52 = vector.load %arg12[%c0_40, %c0_41, %c0_42] : memref<2x64x8xf32, #tpu.memory_space<vmem>>, vector<2x64x8xf32>
      tpu.vector_store %arg12[%c0_40, %c0_41, %c0_42], %51 {strides = array<i32>} : memref<2x64x8xf32, #tpu.memory_space<vmem>>, vector<2x64x8xf32>,
    } else {
    }
    %c64_i32 = arith.constant 64 : i32
    %4 = arith.muli %arg1, %c64_i32 : i32
    %5 = tpu.assume_multiple %4, 64 : i32
    %c0_1 = arith.constant 0 : index
    %6 = arith.index_cast %5 : i32 to index
    %c0_2 = arith.constant 0 : index
    %7 = vector.load %arg10[%c0_1, %6, %c0_2] : memref<2x64x8xf32, #tpu.memory_space<vmem>>, vector<2x64x8xf32>
    %c0_3 = arith.constant 0 : index
    %c0_4 = arith.constant 0 : index
    %c0_5 = arith.constant 0 : index
    %8 = vector.load %arg11[%c0_3, %c0_4, %c0_5] : memref<2x64x8xf32, #tpu.memory_space<vmem>>, vector<2x64x8xf32>
    "tpu.trace_start"() <{level = 10 : i32, message = "bqd,bkd->bqk"}> : () -> ()
    %cst = arith.constant dense<0.000000e+00> : vector<2x64x64xf32>
    %9 = tpu.matmul %7, %8, %cst {dimension_numbers = #tpu.dot_dimension_numbers<[2], [2], [1], [1], [0, 0, 0, 1, 1, 1], [0], [0]>} : vector<2x64x8xf32>, vector<2x64x8xf32>, vector<2x64x64xf32> -> vector<2x64x64xf32>
    "tpu.trace_stop"() : () -> ()
    %cst_6 = arith.constant dense<0xFF800000> : vector<2x64xf32>
    %10 = vector.multi_reduction <maximumf>, %9, %cst_6 [2] : vector<2x64x64xf32> to vector<2x64xf32>
    %11 = vector.shape_cast %10 : vector<2x64xf32> to vector<2x64x1xf32>
    %12 = vector.broadcast %11 : vector<2x64x1xf32> to vector<2x64x64xf32>
    %13 = arith.subf %9, %12 : vector<2x64x64xf32>
    %14 = math.exp %13 : vector<2x64x64xf32>
    %cst_7 = arith.constant dense<0.000000e+00> : vector<2x64xf32>
    %15 = vector.multi_reduction <add>, %14, %cst_7 [2] : vector<2x64x64xf32> to vector<2x64xf32>
    %16 = vector.shape_cast %15 : vector<2x64xf32> to vector<2x64x1xf32>
    %cst_8 = arith.constant 1.000000e+00 : f32
    %17 = vector.broadcast %cst_8 : f32 to vector<2x64x1xf32>
    %18 = arith.divf %17, %16 : vector<2x64x1xf32>
    %19 = vector.broadcast %18 : vector<2x64x1xf32> to vector<2x64x64xf32>
    %20 = arith.mulf %14, %19 : vector<2x64x64xf32>
    %c0_9 = arith.constant 0 : index
    %c0_10 = arith.constant 0 : index
    %c0_11 = arith.constant 0 : index
    %21 = vector.load %arg9[%c0_9, %c0_10, %c0_11] : memref<2x64x64xf32, #tpu.memory_space<vmem>>, vector<2x64x64xf32>
    tpu.vector_store %arg9[%c0_9, %c0_10, %c0_11], %20 {strides = array<i32>} : memref<2x64x64xf32, #tpu.memory_space<vmem>>, vector<2x64x64xf32>,
    %c0_12 = arith.constant 0 : index
    %c0_13 = arith.constant 0 : index
    %c0_14 = arith.constant 0 : index
    %22 = vector.load %arg12[%c0_12, %c0_13, %c0_14] : memref<2x64x8xf32, #tpu.memory_space<vmem>>, vector<2x64x8xf32>
    "tpu.trace_start"() <{level = 10 : i32, message = "bqk,bkd->bqd"}> : () -> ()
    %cst_15 = arith.constant dense<0.000000e+00> : vector<2x64x8xf32>
    %23 = tpu.matmul %20, %22, %cst_15 {dimension_numbers = #tpu.dot_dimension_numbers<[2], [1], [1], [2], [0, 0, 0, 1, 1, 2], [0], [0]>} : vector<2x64x64xf32>, vector<2x64x8xf32>, vector<2x64x8xf32> -> vector<2x64x8xf32>
    "tpu.trace_stop"() : () -> ()
    %24 = vector.shape_cast %23 : vector<2x64x8xf32> to vector<128x8xf32>
    %c0_16 = arith.constant 0 : index
    %c0_17 = arith.constant 0 : index
    %25 = vector.load %arg5[%c0_16, %c0_17] : memref<8x8xf32, #tpu.memory_space<vmem>>, vector<8x8xf32>
    %cst_18 = arith.constant dense<0.000000e+00> : vector<128x8xf32>
    %26 = tpu.matmul %24, %25, %cst_18 {dimension_numbers = #tpu.dot_dimension_numbers<[1], [0], [0], [1], [0, 0, 1, 1], [], []>} : vector<128x8xf32>, vector<8x8xf32>, vector<128x8xf32> -> vector<128x8xf32>
    %27 = vector.shape_cast %26 : vector<128x8xf32> to vector<2x64x8xf32>
    %c0_19 = arith.constant 0 : index
    %c0_20 = arith.constant 0 : index
    %28 = vector.load %arg6[%c0_19, %c0_20] : memref<1x8xf32, #tpu.memory_space<vmem>>, vector<1x8xf32>
    %29 = vector.shape_cast %28 : vector<1x8xf32> to vector<1x1x8xf32>
    %30 = vector.broadcast %29 : vector<1x1x8xf32> to vector<2x64x8xf32>
    %31 = arith.addf %27, %30 : vector<2x64x8xf32>
    %c0_21 = arith.constant 0 : index
    %32 = arith.index_cast %5 : i32 to index
    %c0_22 = arith.constant 0 : index
    %33 = vector.load %arg2[%c0_21, %32, %c0_22] : memref<2x64x8xf32, #tpu.memory_space<vmem>>, vector<2x64x8xf32>
    %34 = vector.broadcast %0 : f32 to vector<2x64x8xf32>
    %35 = arith.mulf %34, %31 : vector<2x64x8xf32>
    %36 = arith.addf %35, %33 : vector<2x64x8xf32>
    %c0_23 = arith.constant 0 : index
    %c0_24 = arith.constant 0 : index
    %c0_25 = arith.constant 0 : index
    %37 = vector.load %arg8[%c0_23, %c0_24, %c0_25] : memref<2x64x8xf32, #tpu.memory_space<vmem>>, vector<2x64x8xf32>
    tpu.vector_store %arg8[%c0_23, %c0_24, %c0_25], %36 {strides = array<i32>} : memref<2x64x8xf32, #tpu.memory_space<vmem>>, vector<2x64x8xf32>,
    return
  }
  func.func @transform_0(%arg0: i32, %arg1: i32) -> (i32, i32, i32) {
    %c0_i32 = arith.constant 0 : i32
    %c0_i32_0 = arith.constant 0 : i32
    %c0_i32_1 = arith.constant 0 : i32
    return %arg0, %c0_i32, %c0_i32_0 : i32, i32, i32
  }
  func.func @transform_1(%arg0: i32, %arg1: i32) -> (i32, i32) {
    %c0_i32 = arith.constant 0 : i32
    %c0_i32_0 = arith.constant 0 : i32
    %c0_i32_1 = arith.constant 0 : i32
    return %c0_i32, %c0_i32_0 : i32, i32
  }
  func.func @transform_2(%arg0: i32, %arg1: i32) -> (i32, i32) {
    %c0_i32 = arith.constant 0 : i32
    %c0_i32_0 = arith.constant 0 : i32
    %c0_i32_1 = arith.constant 0 : i32
    return %c0_i32, %c0_i32_0 : i32, i32
  }
  func.func @transform_3(%arg0: i32, %arg1: i32) -> (i32, i32) {
    %c0_i32 = arith.constant 0 : i32
    %c0_i32_0 = arith.constant 0 : i32
    %c0_i32_1 = arith.constant 0 : i32
    return %c0_i32, %c0_i32_0 : i32, i32
  }
  func.func @transform_4(%arg0: i32, %arg1: i32) -> (i32, i32) {
    %c0_i32 = arith.constant 0 : i32
    %c0_i32_0 = arith.constant 0 : i32
    %c0_i32_1 = arith.constant 0 : i32
    return %c0_i32, %c0_i32_0 : i32, i32
  }
  func.func @transform_5(%arg0: i32, %arg1: i32) -> i32 {
    %c0_i32 = arith.constant 0 : i32
    %c0_i32_0 = arith.constant 0 : i32
    return %c0_i32 : i32
  }
  func.func @transform_6(%arg0: i32, %arg1: i32) -> (i32, i32, i32) {
    %c0_i32 = arith.constant 0 : i32
    %c0_i32_0 = arith.constant 0 : i32
    return %arg0, %arg1, %c0_i32 : i32, i32, i32
  }
  func.func @transform_7(%arg0: i32, %arg1: i32) -> (i32, i32, i32) {
    %c0_i32 = arith.constant 0 : i32
    %c0_i32_0 = arith.constant 0 : i32
    return %arg0, %arg1, %c0_i32 : i32, i32, i32
  }
}

</mosaic_0001>

<bundles_post_ra>
// kernel: tpu_custom_call.1
= control target key start
LH: loop header
LB: loop body
LE: loop exit
PB: predicated region body
PF: predicated region fallthrough
CT: control target
= control target key end

     0   :  { %vm49_vm0 = vcmask 64512   ;;  %s2729_s0 = inlined_call_operand.vmem [shape: f32[2,64,8], index: 0, kind: input, shape index: {}]   ;;  %s2730_s1 = inlined_call_operand.vmem [shape: f32[8,24], index: 1, kind: input, shape index: {}]   ;;  %s2731_s2 = inlined_call_operand.vmem [shape: f32[1,24], index: 2, kind: input, shape index: {}]   ;;  %s2732_s3 = inlined_call_operand.vmem [shape: f32[8,8], index: 3, kind: input, shape index: {}]   ;;  %s2733_s4 = inlined_call_operand.vmem [shape: f32[1,8], index: 4, kind: input, shape index: {}]   ;;  %s2734_s5 = inlined_call_operand.<no memory space> [shape: f32[1], index: 5, kind: input, shape index: {}]   ;;  %s2735_s6 = inlined_call_operand.vmem [shape: f32[2,64,8], index: 6, kind: output, shape index: {0}]   ;;  %s2736_s7 = inlined_call_operand.hbm [shape: f32[2,64,64], index: 7, kind: output, shape index: {1}]  }
   0x1   :  { %v48_v0 = vld [vmem:[%s2730_s1] sm:$0xff]  ;;  %v33_v2 = vld [vmem:[%s2729_s0 + $0x8] sm:$0xff]  ;;  %v34_v3 = vld [vmem:[%s2729_s0 + $0x10] sm:$0xff] }
   0x2   :  { %v32_v1 = vld [vmem:[%s2729_s0] sm:$0xff]  ;;  %1733 = vmatprep.subr.mxu0 %v48_v0  ;;  %v35_v4 = vld [vmem:[%s2729_s0 + $0x18] sm:$0xff] }
   0x3   :  { %1735 = vmatprep.mubr.msk.f32.mxu0 %vm49_vm0, %v32_v1  ;;  %1734 = vmatpush3.msra.mxu0 %v48_v0  ;;  %v36_v5 = vld [vmem:[%s2729_s0 + $0x20] sm:$0xff] }
   0x4   :  { %1736 = vmatmul.mubr.msk.f32.vlgmr.msra.gmra.mrb[0].mxu0 %vm49_vm0, %v33_v2 }
   0x5   :  { %1738 = vmatprep.mubr.msk.f32.mxu0 %vm49_vm0, %v34_v3 }
   0x6   :  { %14 = vsyncpa [#allocation7], 0  ;;  %v37_v6 = vld [vmem:[%s2729_s0 + $0x28] sm:$0xff]  ;;  %v38_v7 = vld [vmem:[%s2729_s0 + $0x30] sm:$0xff]  ;;  %s2070_s12 = smov 120   ;;  %vm767_vm2 = vcmask 523264  }
   0x7   :  { %v39_v8 = vld [vmem:[%s2729_s0 + $0x38] sm:$0xff]  ;;  %v40_v9 = vld [vmem:[%s2729_s0 + $0x40] sm:$0xff]  ;;  %v41_v10 = vld [vmem:[%s2729_s0 + $0x48] sm:$0xff] }
   0x8   :  { %1739 = vmatmul.mubr.msk.f32.gmra.mrb[2].mxu0 %vm49_vm0, %v35_v4  ;;  %v42_v11 = vld [vmem:[%s2729_s0 + $0x50] sm:$0xff]  ;;  %v43_v12 = vld [vmem:[%s2729_s0 + $0x58] sm:$0xff]  ;;  %v44_v13 = vld [vmem:[%s2729_s0 + $0x60] sm:$0xff] }
   0x9   :  { %1741 = vmatprep.mubr.msk.f32.mxu0 %vm49_vm0, %v36_v5  ;;  %v45_v14 = vld [vmem:[%s2729_s0 + $0x68] sm:$0xff]  ;;  %v46_v15 = vld [vmem:[%s2729_s0 + $0x70] sm:$0xff]  ;;  %v47_v16 = vld [vmem:[%s2729_s0 + $0x78] sm:$0xff] }
   0xa   :  { %v2185_v17 = vld [vmem:[%s2731_s2] ss:$0 sm:$0xff]  ;;  %s2071_s2 = smov 112   ;;  %vm2288_vm1 = vmpackc.low %vm49_vm0, %vm49_vm0 }
   0xc   :  { %1742 = vmatmul.mubr.msk.f32.gmra.mrb[4].mxu0 %vm49_vm0, %v37_v6 }
   0xd   :  { %1744 = vmatprep.mubr.msk.f32.mxu0 %vm49_vm0, %v38_v7 }
  0x10   :  { %1745 = vmatmul.mubr.msk.f32.gmra.mrb[6].mxu0 %vm49_vm0, %v39_v8 }
  0x11   :  { %1747 = vmatprep.mubr.msk.f32.mxu0 %vm49_vm0, %v40_v9 }
  0x14   :  { %1748 = vmatmul.mubr.msk.f32.gmra.mrb[8].mxu0 %vm49_vm0, %v41_v10 }
  0x15   :  { %1750 = vmatprep.mubr.msk.f32.mxu0 %vm49_vm0, %v42_v11 }
  0x18   :  { %1751 = vmatmul.mubr.msk.f32.gmra.mrb[10].mxu0 %vm49_vm0, %v43_v12 }
  0x19   :  { %1753 = vmatprep.mubr.msk.f32.mxu0 %vm49_vm0, %v44_v13 }
  0x1c   :  { %1754 = vmatmul.mubr.msk.f32.gmra.mrb[12].mxu0 %vm49_vm0, %v45_v14 }
  0x1d   :  { %1756 = vmatprep.mubr.msk.f32.mxu0 %vm49_vm0, %v46_v15 }
  0x20   :  { %1757 = vmatmul.mubr.msk.f32.gmra.mrb[14].mxu0 %vm49_vm0, %v47_v16 }
  0xd7   :  { %v1737_v18 = vpop.f32.mrb[0].mxu0 }
  0xd8   :  { %v2188_v19 = vadd.f32 %v1737_v18, %v2185_v17  ;;  %v164_v20 = vpop.f32.mrb[1].mxu0 }
  0xd9   :  { %v2191_v21 = vadd.f32 %v2185_v17, %v164_v20 }
  0xda   :  { %267 = vst.msk [vmem:[#allocation2 + $0x8] sm:$0xff] %vm49_vm0, %v2188_v19 }
  0xdb   :  { %266 = vst.msk [vmem:[#allocation2] sm:$0xff] %vm49_vm0, %v2191_v21  ;;  %298 = vrot.lane.b32.xlu0 %v2191_v21, %s2070_s12  ;;  %v1740_v22 = vpop.f32.mrb[2].mxu0 }
  0xdc   :  { %v2200_v23 = vadd.f32 %v1740_v22, %v2185_v17  ;;  %v174_v24 = vpop.f32.mrb[3].mxu0 }
  0xdd   :  { %v252_v25 = vadd.f32 %v2185_v17, %v174_v24 }
  0xde   :  { %269 = vst.msk [vmem:[#allocation2 + $0x18] sm:$0xff] %vm49_vm0, %v2200_v23  ;;  %304 = vrot.lane.b32.xlu1 %v2200_v23, %s2070_s12 }
  0xdf   :  { %300 = vrot.lane.b32.xlu0 %v2188_v19, %s2070_s12  ;;  %268 = vst.msk [vmem:[#allocation2 + $0x10] sm:$0xff] %vm49_vm0, %v252_v25  ;;  %v1743_v26 = vpop.f32.mrb[4].mxu0 }
  0xe0   :  { %v255_v27 = vadd.f32 %v1743_v26, %v2185_v17  ;;  %v184_v28 = vpop.f32.mrb[5].mxu0 }
  0xe1   :  { %v254_v29 = vadd.f32 %v2185_v17, %v184_v28 }
  0xe2   :  { %302 = vrot.lane.b32.xlu1 %v252_v25, %s2070_s12  ;;  %271 = vst.msk [vmem:[#allocation2 + $0x28] sm:$0xff] %vm49_vm0, %v255_v27  ;;  %v428_v30 = vld [vmem:[#allocation2] sm:$0xff] }
  0xe3   :  { %1775 = vmatprep.mubr.msk.f32.mxu1 %vm49_vm0, %v428_v30  ;;  %270 = vst.msk [vmem:[#allocation2 + $0x20] sm:$0xff] %vm49_vm0, %v254_v29  ;;  %v1746_v31 = vpop.f32.mrb[6].mxu0  ;;  %306 = vrot.lane.b32.xlu0 %v254_v29, %s2070_s12 }
  0xe4   :  { %v257_v32 = vadd.f32 %v1746_v31, %v2185_v17  ;;  %v194_v33 = vpop.f32.mrb[7].mxu0 }
  0xe5   :  { %v256_v34 = vadd.f32 %v2185_v17, %v194_v33 }
  0xe6   :  { %273 = vst.msk [vmem:[#allocation2 + $0x38] sm:$0xff] %vm49_vm0, %v257_v32  ;;  %308 = vrot.lane.b32.xlu1 %v255_v27, %s2070_s12 }
  0xe7   :  { %272 = vst.msk [vmem:[#allocation2 + $0x30] sm:$0xff] %vm49_vm0, %v256_v34  ;;  %v1749_v35 = vpop.f32.mrb[8].mxu0 }
  0xe8   :  { %v259_v36 = vadd.f32 %v1749_v35, %v2185_v17  ;;  %v204_v37 = vpop.f32.mrb[9].mxu0  ;;  %v429_v35 = vld [vmem:[#allocation2 + $0x8] sm:$0xff] }
  0xe9   :  { %v258_v38 = vadd.f32 %v2185_v17, %v204_v37  ;;  %v430_v37 = vld [vmem:[#allocation2 + $0x10] sm:$0xff] }
  0xea   :  { %275 = vst.msk [vmem:[#allocation2 + $0x48] sm:$0xff] %vm49_vm0, %v259_v36  ;;  %316 = vrot.lane.b32.xlu1 %v259_v36, %s2070_s12 }
  0xeb   :  { %274 = vst.msk [vmem:[#allocation2 + $0x40] sm:$0xff] %vm49_vm0, %v258_v38  ;;  %314 = vrot.lane.b32.xlu0 %v258_v38, %s2070_s12  ;;  %v1752_v39 = vpop.f32.mrb[10].mxu0 }
  0xec   :  { %v261_v40 = vadd.f32 %v1752_v39, %v2185_v17  ;;  %v214_v41 = vpop.f32.mrb[11].mxu0 }
  0xed   :  { %v260_v42 = vadd.f32 %v2185_v17, %v214_v41  ;;  %v431_v41 = vld [vmem:[#allocation2 + $0x18] sm:$0xff] }
  0xee   :  { %312 = vrot.lane.b32.xlu1 %v257_v32, %s2070_s12  ;;  %277 = vst.msk [vmem:[#allocation2 + $0x58] sm:$0xff] %vm49_vm0, %v261_v40 }
  0xef   :  { %310 = vrot.lane.b32.xlu0 %v256_v34, %s2070_s12  ;;  %276 = vst.msk [vmem:[#allocation2 + $0x50] sm:$0xff] %vm49_vm0, %v260_v42  ;;  %v1755_v43 = vpop.f32.mrb[12].mxu0 }
  0xf0   :  { %v2235_v44 = vadd.f32 %v1755_v43, %v2185_v17  ;;  %v224_v45 = vpop.f32.mrb[13].mxu0  ;;  %v432_v43 = vld [vmem:[#allocation2 + $0x20] sm:$0xff] }
  0xf1   :  { %v2238_v46 = vadd.f32 %v2185_v17, %v224_v45 }
  0xf2   :  { %320 = vrot.lane.b32.xlu1 %v261_v40, %s2070_s12  ;;  %279 = vst.msk [vmem:[#allocation2 + $0x68] sm:$0xff] %vm49_vm0, %v2235_v44  ;;  %v436_v47 = vld [vmem:[#allocation2 + $0x40] sm:$0xff] }
  0xf3   :  { %318 = vrot.lane.b32.xlu0 %v260_v42, %s2070_s12  ;;  %278 = vst.msk [vmem:[#allocation2 + $0x60] sm:$0xff] %vm49_vm0, %v2238_v46  ;;  %v1758_v48 = vpop.f32.mrb[14].mxu0  ;;  %1803 = vmatprep.mubr.msk.f32.mxu0 %vm49_vm0, %v436_v47 }
  0xf4   :  { %v2248_v49 = vadd.f32 %v1758_v48, %v2185_v17  ;;  %v234_v50 = vpop.f32.mrb[15].mxu0  ;;  %v433_v48 = vld [vmem:[#allocation2 + $0x28] sm:$0xff] }
  0xf5   :  { %v2251_v51 = vadd.f32 %v2185_v17, %v234_v50 }
  0xf6   :  { %324 = vrot.lane.b32.xlu1 %v2235_v44, %s2070_s12  ;;  %281 = vst.msk [vmem:[#allocation2 + $0x78] sm:$0xff] %vm49_vm0, %v2248_v49 }
  0xf7   :  { %322 = vrot.lane.b32.xlu0 %v2238_v46, %s2070_s12  ;;  %280 = vst.msk [vmem:[#allocation2 + $0x70] sm:$0xff] %vm49_vm0, %v2251_v51 }
  0xfa   :  { %328 = vrot.lane.b32.xlu1 %v2248_v49, %s2070_s12 }
  0xfb   :  { %326 = vrot.lane.b32.xlu0 %v2251_v51, %s2070_s12 }
  0xfe   :  { %362 = vrot.lane.b32.xlu1 %v2191_v21, %s2071_s2 }
  0xff   :  { %364 = vrot.lane.b32.xlu0 %v2188_v19, %s2071_s2 }
 0x102   :  { %366 = vrot.lane.b32.xlu1 %v252_v25, %s2071_s2 }
 0x103   :  { %368 = vrot.lane.b32.xlu0 %v2200_v23, %s2071_s2 }
 0x106   :  { %370 = vrot.lane.b32.xlu1 %v254_v29, %s2071_s2 }
 0x107   :  { %372 = vrot.lane.b32.xlu0 %v255_v27, %s2071_s2 }
 0x10a   :  { %374 = vrot.lane.b32.xlu1 %v256_v34, %s2071_s2 }
 0x10b   :  { %376 = vrot.lane.b32.xlu0 %v257_v32, %s2071_s2 }
 0x10e   :  { %378 = vrot.lane.b32.xlu1 %v258_v38, %s2071_s2 }
 0x10f   :  { %380 = vrot.lane.b32.xlu0 %v259_v36, %s2071_s2 }
 0x112   :  { %382 = vrot.lane.b32.xlu1 %v260_v42, %s2071_s2 }
 0x113   :  { %384 = vrot.lane.b32.xlu0 %v261_v40, %s2071_s2 }
 0x14d   :  { %v299_v52 = vpop.permute.xlu0 %298 }
 0x14e   :  { %346 = vst.msk [vmem:[#allocation3] sm:$0xff] %vm49_vm0, %v299_v52  ;;  %v434_v52 = vld [vmem:[#allocation2 + $0x30] sm:$0xff] }
 0x150   :  { %v305_v53 = vpop.permute.xlu1 %304 }
 0x151   :  { %349 = vst.msk [vmem:[#allocation3 + $0x18] sm:$0xff] %vm49_vm0, %v305_v53  ;;  %v301_v54 = vpop.permute.xlu0 %300 }
 0x152   :  { %347 = vst.msk [vmem:[#allocation3 + $0x8] sm:$0xff] %vm49_vm0, %v301_v54 }
 0x154   :  { %v303_v55 = vpop.permute.xlu1 %302 }
 0x155   :  { %348 = vst.msk [vmem:[#allocation3 + $0x10] sm:$0xff] %vm49_vm0, %v303_v55  ;;  %v307_v56 = vpop.permute.xlu0 %306  ;;  %v444_v58 = vld [vmem:[#allocation3] sm:$0xff] }
 0x156   :  { %350 = vst.msk [vmem:[#allocation3 + $0x20] sm:$0xff] %vm49_vm0, %v307_v56  ;;  %v435_v56 = vld [vmem:[#allocation2 + $0x38] sm:$0xff] }
 0x158   :  { %v309_v57 = vpop.permute.xlu1 %308  ;;  %v447_v62 = vld [vmem:[#allocation3 + $0x18] sm:$0xff] }
 0x159   :  { %351 = vst.msk [vmem:[#allocation3 + $0x28] sm:$0xff] %vm49_vm0, %v309_v57  ;;  %v445_v59 = vld [vmem:[#allocation3 + $0x8] sm:$0xff] }
 0x15a   :  { %v1897_v61 = vpack.c.bf16 %v445_v59, %v444_v58  ;;  %v437_v57 = vld [vmem:[#allocation2 + $0x48] sm:$0xff]  ;;  %v438_v58 = vld [vmem:[#allocation2 + $0x50] sm:$0xff] }
 0x15c   :  { %1899 = vmatprep.subr.msk.bf16.mxu1 %vm2288_vm1, %v1897_v61  ;;  %v317_v63 = vpop.permute.xlu1 %316  ;;  %v446_v0 = vld [vmem:[#allocation3 + $0x10] sm:$0xff] }
 0x15d   :  { %355 = vst.msk [vmem:[#allocation3 + $0x48] sm:$0xff] %vm49_vm0, %v317_v63  ;;  %1902 = vmatpush3.bf16.xpose.msk.msra.mxu1 %vm2288_vm1, %v1897_v61  ;;  %v315_v1 = vpop.permute.xlu0 %314  ;;  %v1903_v2 = vpack.c.bf16 %v447_v62, %v446_v0  ;;  %v448_v3 = vld [vmem:[#allocation3 + $0x20] sm:$0xff]  ;;  %v439_v62 = vld [vmem:[#allocation2 + $0x58] sm:$0xff] }
 0x15e   :  { %354 = vst.msk [vmem:[#allocation3 + $0x40] sm:$0xff] %vm49_vm0, %v315_v1  ;;  %v440_v63 = vld [vmem:[#allocation2 + $0x60] sm:$0xff] }
 0x15f   :  { %1905 = vmatprep.subr.msk.bf16.mxu1 %vm2288_vm1, %v1903_v2 }
 0x160   :  { %v313_v4 = vpop.permute.xlu1 %312  ;;  %v449_v5 = vld [vmem:[#allocation3 + $0x28] sm:$0xff] }
 0x161   :  { %353 = vst.msk [vmem:[#allocation3 + $0x38] sm:$0xff] %vm49_vm0, %v313_v4  ;;  %v311_v6 = vpop.permute.xlu0 %310  ;;  %v1909_v7 = vpack.c.bf16 %v449_v5, %v448_v3  ;;  %v441_v3 = vld [vmem:[#allocation2 + $0x68] sm:$0xff]  ;;  %v442_v4 = vld [vmem:[#allocation2 + $0x70] sm:$0xff] }
 0x162   :  { %352 = vst.msk [vmem:[#allocation3 + $0x30] sm:$0xff] %vm49_vm0, %v311_v6 }
 0x164   :  { %v321_v8 = vpop.permute.xlu1 %320  ;;  %v453_v9 = vld [vmem:[#allocation3 + $0x48] sm:$0xff] }
 0x165   :  { %357 = vst.msk [vmem:[#allocation3 + $0x58] sm:$0xff] %vm49_vm0, %v321_v8  ;;  %1908 = vmatpush3.bf16.xpose.msk.msra.mxu1 %vm2288_vm1, %v1903_v2  ;;  %v319_v10 = vpop.permute.xlu0 %318  ;;  %v452_v11 = vld [vmem:[#allocation3 + $0x40] sm:$0xff]  ;;  %v443_v8 = vld [vmem:[#allocation2 + $0x78] sm:$0xff] }
 0x166   :  { %356 = vst.msk [vmem:[#allocation3 + $0x50] sm:$0xff] %vm49_vm0, %v319_v10  ;;  %1911 = vmatprep.subr.msk.bf16.mxu1 %vm2288_vm1, %v1909_v7  ;;  %v1921_v12 = vpack.c.bf16 %v453_v9, %v452_v11 }
 0x168   :  { %1923 = vmatprep.subr.msk.bf16.mxu0 %vm2288_vm1, %v1921_v12  ;;  %v325_v13 = vpop.permute.xlu1 %324  ;;  %v451_v16 = vld [vmem:[#allocation3 + $0x38] sm:$0xff] }
 0x169   :  { %359 = vst.msk [vmem:[#allocation3 + $0x68] sm:$0xff] %vm49_vm0, %v325_v13  ;;  %1926 = vmatpush3.bf16.xpose.msk.msra.mxu0 %vm2288_vm1, %v1921_v12  ;;  %v323_v14 = vpop.permute.xlu0 %322  ;;  %v450_v15 = vld [vmem:[#allocation3 + $0x30] sm:$0xff] }
 0x16a   :  { %358 = vst.msk [vmem:[#allocation3 + $0x60] sm:$0xff] %vm49_vm0, %v323_v14  ;;  %v1915_v18 = vpack.c.bf16 %v451_v16, %v450_v15 }
 0x16c   :  { %v329_v17 = vpop.permute.xlu1 %328  ;;  %v455_v19 = vld [vmem:[#allocation3 + $0x58] sm:$0xff] }
 0x16d   :  { %361 = vst.msk [vmem:[#allocation3 + $0x78] sm:$0xff] %vm49_vm0, %v329_v17  ;;  %1914 = vmatpush3.bf16.xpose.msk.msra.mxu1 %vm2288_vm1, %v1909_v7  ;;  %v327_v20 = vpop.permute.xlu0 %326  ;;  %v454_v21 = vld [vmem:[#allocation3 + $0x50] sm:$0xff] }
 0x16e   :  { %360 = vst.msk [vmem:[#allocation3 + $0x70] sm:$0xff] %vm49_vm0, %v327_v20  ;;  %1917 = vmatprep.subr.msk.bf16.mxu1 %vm2288_vm1, %v1915_v18  ;;  %v1927_v22 = vpack.c.bf16 %v455_v19, %v454_v21 }
 0x170   :  { %1929 = vmatprep.subr.msk.bf16.mxu0 %vm2288_vm1, %v1927_v22  ;;  %v363_v23 = vpop.permute.xlu1 %362  ;;  %v457_v24 = vld [vmem:[#allocation3 + $0x68] sm:$0xff] }
 0x171   :  { %410 = vst.msk [vmem:[#allocation4] sm:$0xff] %vm49_vm0, %v363_v23  ;;  %1932 = vmatpush3.bf16.xpose.msk.msra.mxu0 %vm2288_vm1, %v1927_v22  ;;  %v365_v25 = vpop.permute.xlu0 %364  ;;  %v456_v26 = vld [vmem:[#allocation3 + $0x60] sm:$0xff] }
 0x172   :  { %411 = vst.msk [vmem:[#allocation4 + $0x8] sm:$0xff] %vm49_vm0, %v365_v25  ;;  %v1933_v27 = vpack.c.bf16 %v457_v24, %v456_v26 }
 0x174   :  { %v367_v28 = vpop.permute.xlu1 %366  ;;  %1935 = vmatprep.subr.msk.bf16.mxu0 %vm2288_vm1, %v1933_v27  ;;  %v459_v29 = vld [vmem:[#allocation3 + $0x78] sm:$0xff] }
 0x175   :  { %412 = vst.msk [vmem:[#allocation4 + $0x10] sm:$0xff] %vm49_vm0, %v367_v28  ;;  %1920 = vmatpush3.bf16.xpose.msk.msra.mxu1 %vm2288_vm1, %v1915_v18  ;;  %v369_v30 = vpop.permute.xlu0 %368  ;;  %v458_v31 = vld [vmem:[#allocation3 + $0x70] sm:$0xff] }
 0x176   :  { %413 = vst.msk [vmem:[#allocation4 + $0x18] sm:$0xff] %vm49_vm0, %v369_v30  ;;  %v1939_v32 = vpack.c.bf16 %v459_v29, %v458_v31 }
 0x178   :  { %v371_v33 = vpop.permute.xlu1 %370  ;;  %v976_v39 = vld [vmem:[#allocation4] sm:$0xff] }
 0x179   :  { %414 = vst.msk [vmem:[#allocation4 + $0x20] sm:$0xff] %vm49_vm0, %v371_v33  ;;  %1938 = vmatpush3.bf16.xpose.msk.msra.mxu0 %vm2288_vm1, %v1933_v27  ;;  %v373_v34 = vpop.permute.xlu0 %372  ;;  %v977_v40 = vld [vmem:[#allocation4 + $0x8] sm:$0xff] }
 0x17a   :  { %415 = vst.msk [vmem:[#allocation4 + $0x28] sm:$0xff] %vm49_vm0, %v373_v34  ;;  %1941 = vmatprep.subr.msk.bf16.mxu0 %vm2288_vm1, %v1939_v32  ;;  %v1945_v45 = vpack.c.bf16 %v977_v40, %v976_v39 }
 0x17c   :  { %1776 = vmatmul.mubr.msk.f32.vlgmr.msra.gmra.mrb[0].mxu1 %vm49_vm0, %v429_v35  ;;  %v375_v36 = vpop.permute.xlu1 %374  ;;  %v978_v54 = vld [vmem:[#allocation4 + $0x10] sm:$0xff] }
 0x17d   :  { %416 = vst.msk [vmem:[#allocation4 + $0x30] sm:$0xff] %vm49_vm0, %v375_v36  ;;  %1778 = vmatprep.mubr.msk.f32.mxu1 %vm49_vm0, %v430_v37  ;;  %v377_v38 = vpop.permute.xlu0 %376  ;;  %v979_v55 = vld [vmem:[#allocation4 + $0x18] sm:$0xff] }
 0x17e   :  { %417 = vst.msk [vmem:[#allocation4 + $0x38] sm:$0xff] %vm49_vm0, %v377_v38  ;;  %v1949_v59 = vpack.c.bf16 %v979_v55, %v978_v54 }
 0x180   :  { %1779 = vmatmul.mubr.msk.f32.gmra.mrb[2].mxu1 %vm49_vm0, %v431_v41  ;;  %v379_v42 = vpop.permute.xlu1 %378  ;;  %v980_v60 = vld [vmem:[#allocation4 + $0x20] sm:$0xff] }
 0x181   :  { %418 = vst.msk [vmem:[#allocation4 + $0x40] sm:$0xff] %vm49_vm0, %v379_v42  ;;  %1781 = vmatprep.mubr.msk.f32.mxu1 %vm49_vm0, %v432_v43  ;;  %1944 = vmatpush3.bf16.xpose.msk.msra.mxu0 %vm2288_vm1, %v1939_v32  ;;  %v381_v47 = vpop.permute.xlu0 %380  ;;  %v981_v61 = vld [vmem:[#allocation4 + $0x28] sm:$0xff] }
 0x182   :  { %419 = vst.msk [vmem:[#allocation4 + $0x48] sm:$0xff] %vm49_vm0, %v381_v47  ;;  %1946 = vmatprep.subr.bf16.mxu0 %v1945_v45  ;;  %v1953_v0 = vpack.c.bf16 %v981_v61, %v980_v60 }
 0x184   :  { %1782 = vmatmul.mubr.msk.f32.gmra.mrb[4].mxu1 %vm49_vm0, %v433_v48  ;;  %v383_v50 = vpop.permute.xlu1 %382  ;;  %v982_v1 = vld [vmem:[#allocation4 + $0x30] sm:$0xff] }
 0x185   :  { %420 = vst.msk [vmem:[#allocation4 + $0x50] sm:$0xff] %vm49_vm0, %v383_v50  ;;  %1784 = vmatprep.mubr.msk.f32.mxu1 %vm49_vm0, %v434_v52  ;;  %v385_v53 = vpop.permute.xlu0 %384  ;;  %v983_v2 = vld [vmem:[#allocation4 + $0x38] sm:$0xff] }
 0x186   :  { %421 = vst.msk [vmem:[#allocation4 + $0x58] sm:$0xff] %vm49_vm0, %v385_v53  ;;  %v1957_v5 = vpack.c.bf16 %v983_v2, %v982_v1 }
 0x188   :  { %1785 = vmatmul.mubr.msk.f32.gmra.mrb[6].mxu1 %vm49_vm0, %v435_v56  ;;  %1804 = vmatmul.mubr.msk.f32.vlgmr.msra.gmra.mrb[16].mxu0 %vm49_vm0, %v437_v57  ;;  %v984_v6 = vld [vmem:[#allocation4 + $0x40] sm:$0xff] }
 0x189   :  { %1806 = vmatprep.mubr.msk.f32.mxu0 %vm49_vm0, %v438_v58  ;;  %1948 = vmatpush3.bf16.msra.mxu0 %v1945_v45  ;;  %v985_v7 = vld [vmem:[#allocation4 + $0x48] sm:$0xff] }
 0x18a   :  { %1950 = vmatprep.subr.bf16.mxu0 %v1949_v59  ;;  %v2360_v9 = vpack.c.bf16 %v985_v7, %v984_v6 }
 0x18c   :  { %1807 = vmatmul.mubr.msk.f32.gmra.mrb[18].mxu0 %vm49_vm0, %v439_v62 }
 0x18d   :  { %1809 = vmatprep.mubr.msk.f32.mxu0 %vm49_vm0, %v440_v63  ;;  %1952 = vmatpush3.bf16.msra.mxu0 %v1949_v59 }
 0x18e   :  { %1954 = vmatprep.subr.bf16.mxu0 %v1953_v0 }
 0x190   :  { %1810 = vmatmul.mubr.msk.f32.gmra.mrb[20].mxu0 %vm49_vm0, %v441_v3 }
 0x191   :  { %1812 = vmatprep.mubr.msk.f32.mxu0 %vm49_vm0, %v442_v4  ;;  %1956 = vmatpush3.bf16.msra.mxu0 %v1953_v0 }
 0x192   :  { %1958 = vmatprep.subr.bf16.mxu0 %v1957_v5 }
 0x194   :  { %1813 = vmatmul.mubr.msk.f32.gmra.mrb[22].mxu0 %vm49_vm0, %v443_v8 }
 0x195   :  { %1960 = vmatpush3.bf16.msra.mxu0 %v1957_v5 }
 0x196   :  { %1962 = vmatprep.subr.bf16.mxu0 %v2360_v9 }
 0x24f   :  { %v1777_v10 = vpop.f32.mrb[0].mxu1 }
 0x250   :  { %v575_v11 = vpop.f32.mrb[1].mxu1  ;;  %v771_v12 = vsel %vm767_vm2, %v1777_v10, -inf }
 0x251   :  { %772 = vmax.xlane.f32.xlu1 %v771_v12  ;;  %v768_v13 = vsel %vm767_vm2, %v575_v11, -inf }
 0x252   :  { %769 = vmax.xlane.f32.xlu0 %v768_v13 }
 0x253   :  { %v1780_v14 = vpop.f32.mrb[2].mxu1 }
 0x254   :  { %v585_v15 = vpop.f32.mrb[3].mxu1  ;;  %v777_v16 = vsel %vm767_vm2, %v1780_v14, -inf }
 0x255   :  { %v774_v20 = vsel %vm767_vm2, %v585_v15, -inf }
 0x256   :  { %778 = vmax.xlane.f32.xlu0 %v777_v16 }
 0x257   :  { %v2366_v17 = vpop.f32.mrb[4].mxu1 }
 0x258   :  { %v595_v18 = vpop.f32.mrb[5].mxu1  ;;  %v783_v26 = vsel %vm767_vm2, %v2366_v17, -inf }
 0x259   :  { %v780_v19 = vsel %vm767_vm2, %v595_v18, -inf }
 0x25a   :  { %781 = vmax.xlane.f32.xlu1 %v780_v19  ;;  %775 = vmax.xlane.f32.xlu0 %v774_v20 }
 0x25b   :  { %v2370_v21 = vpop.f32.mrb[6].mxu1  ;;  %v2372_v22 = vpop.f32.mrb[16].mxu0 }
 0x25c   :  { %v605_v23 = vpop.f32.mrb[7].mxu1  ;;  %v2374_v24 = vpop.f32.mrb[17].mxu0  ;;  %v789_v29 = vsel %vm767_vm2, %v2370_v21, -inf  ;;  %v795_v33 = vsel %vm767_vm2, %v2372_v22, -inf }
 0x25d   :  { %v786_v25 = vsel %vm767_vm2, %v605_v23, -inf  ;;  %v792_v30 = vsel %vm767_vm2, %v2374_v24, -inf }
 0x25e   :  { %787 = vmax.xlane.f32.xlu1 %v786_v25  ;;  %784 = vmax.xlane.f32.xlu0 %v783_v26 }
 0x25f   :  { %v2379_v27 = vpop.f32.mrb[18].mxu0 }
 0x260   :  { %v2381_v28 = vpop.f32.mrb[19].mxu0  ;;  %v801_v37 = vsel %vm767_vm2, %v2379_v27, -inf }
 0x261   :  { %v798_v34 = vsel %vm767_vm2, %v2381_v28, -inf }
 0x262   :  { %790 = vmax.xlane.f32.xlu0 %v789_v29  ;;  %793 = vmax.xlane.f32.xlu1 %v792_v30 }
 0x263   :  { %v2387_v31 = vpop.f32.mrb[20].mxu0 }
 0x264   :  { %v2389_v32 = vpop.f32.mrb[21].mxu0  ;;  %v807_v39 = vsel %vm767_vm2, %v2387_v31, -inf }
 0x265   :  { %v804_v38 = vsel %vm767_vm2, %v2389_v32, -inf }
 0x266   :  { %796 = vmax.xlane.f32.xlu0 %v795_v33  ;;  %799 = vmax.xlane.f32.xlu1 %v798_v34 }
 0x267   :  { %v2395_v35 = vpop.f32.mrb[22].mxu0 }
 0x268   :  { %v2397_v36 = vpop.f32.mrb[23].mxu0  ;;  %v813_v41 = vsel %vm767_vm2, %v2395_v35, -inf }
 0x269   :  { %v810_v40 = vsel %vm767_vm2, %v2397_v36, -inf }
 0x26a   :  { %802 = vmax.xlane.f32.xlu0 %v801_v37  ;;  %805 = vmax.xlane.f32.xlu1 %v804_v38 }
 0x26e   :  { %808 = vmax.xlane.f32.xlu0 %v807_v39  ;;  %811 = vmax.xlane.f32.xlu1 %v810_v40 }
 0x272   :  { %814 = vmax.xlane.f32.xlu0 %v813_v41 }
 0x27f   :  { %386 = vrot.lane.b32.xlu1 %v2238_v46, %s2071_s2 }
 0x288   :  { %388 = vrot.lane.b32.xlu0 %v2235_v44, %s2071_s2 }
 0x2de   :  { %v773_v42 = vpop.xlane.xlu1 %772 }
 0x2df   :  { %v817_v43 = vsub.f32 %v1777_v10, %v773_v42  ;;  %v770_v45 = vpop.xlane.xlu0 %769 }
 0x2e0   :  { %v816_v47 = vsub.f32 %v575_v11, %v770_v45 }
 0x2e1   :  { %v834_v48 = vmul.f32 1.442695, %v817_v43 }
 0x2e2   :  { %v832_v50 = vmul.f32 1.442695, %v816_v47 }
 0x2e3   :  { %1982 = vpow2.f32 %v834_v48  ;;  %v779_v52 = vpop.xlane.xlu0 %778 }
 0x2e4   :  { %1984 = vpow2.f32 %v832_v50  ;;  %v819_v53 = vsub.f32 %v1780_v14, %v779_v52 }
 0x2e6   :  { %v838_v54 = vmul.f32 1.442695, %v819_v53 }
 0x2e7   :  { %v782_v55 = vpop.xlane.xlu1 %781  ;;  %v776_v56 = vpop.xlane.xlu0 %775 }
 0x2e8   :  { %1986 = vpow2.f32 %v838_v54  ;;  %v820_v57 = vsub.f32 %v595_v18, %v782_v55  ;;  %v818_v58 = vsub.f32 %v585_v15, %v776_v56 }
 0x2ea   :  { %v836_v46 = vmul.f32 1.442695, %v818_v58  ;;  %v840_v59 = vmul.f32 1.442695, %v820_v57 }
 0x2eb   :  { %v788_v60 = vpop.xlane.xlu1 %787  ;;  %v785_v44 = vpop.xlane.xlu0 %784 }
 0x2ec   :  { %v822_v61 = vsub.f32 %v605_v23, %v788_v60  ;;  %v821_v62 = vsub.f32 %v2366_v17, %v785_v44  ;;  %1988 = vpow2.f32 %v836_v46 }
 0x2ed   :  { %v2414_v63 = vpop.eup %1982  ;;  %1990 = vpow2.f32 %v840_v59 }
 0x2ee   :  { %v2416_v0 = vpop.eup %1984  ;;  %v842_v1 = vmul.f32 1.442695, %v821_v62  ;;  %v867_v2 = vsel %vm767_vm2, %v2414_v63, 0.0  ;;  %v844_v3 = vmul.f32 1.442695, %v822_v61 }
 0x2ef   :  { %v794_v4 = vpop.xlane.xlu1 %793  ;;  %v791_v5 = vpop.xlane.xlu0 %790  ;;  %868 = vadd.xlane.f32.xlu0 %v867_v2  ;;  %v864_v6 = vsel %vm767_vm2, %v2416_v0, 0.0 }
 0x2f0   :  { %v824_v7 = vsub.f32 %v2374_v24, %v794_v4  ;;  %v823_v8 = vsub.f32 %v2370_v21, %v791_v5  ;;  %865 = vadd.xlane.f32.xlu1 %v864_v6  ;;  %1992 = vpow2.f32 %v842_v1 }
 0x2f1   :  { %1994 = vpow2.f32 %v844_v3 }
 0x2f2   :  { %v2424_v10 = vpop.eup %1986  ;;  %v846_v11 = vmul.f32 1.442695, %v823_v8  ;;  %v848_v12 = vmul.f32 1.442695, %v824_v7 }
 0x2f3   :  { %v800_v13 = vpop.xlane.xlu1 %799  ;;  %v797_v14 = vpop.xlane.xlu0 %796  ;;  %v873_v15 = vsel %vm767_vm2, %v2424_v10, 0.0 }
 0x2f4   :  { %v826_v16 = vsub.f32 %v2381_v28, %v800_v13  ;;  %v825_v17 = vsub.f32 %v2372_v22, %v797_v14  ;;  %874 = vadd.xlane.f32.xlu0 %v873_v15  ;;  %1996 = vpow2.f32 %v846_v11  ;;  %v986_v13 = vld [vmem:[#allocation4 + $0x50] sm:$0xff]  ;;  %v987_v14 = vld [vmem:[#allocation4 + $0x58] sm:$0xff] }
 0x2f5   :  { %1998 = vpow2.f32 %v848_v12 }
 0x2f6   :  { %v850_v18 = vmul.f32 1.442695, %v825_v17  ;;  %v2430_v19 = vpop.eup %1988  ;;  %v852_v20 = vmul.f32 1.442695, %v826_v16  ;;  %v1965_v16 = vpack.c.bf16 %v987_v14, %v986_v13 }
 0x2f7   :  { %v806_v21 = vpop.xlane.xlu1 %805  ;;  %v803_v23 = vpop.xlane.xlu0 %802  ;;  %v870_v26 = vsel %vm767_vm2, %v2430_v19, 0.0 }
 0x2f8   :  { %v828_v24 = vsub.f32 %v2389_v32, %v806_v21  ;;  %v827_v25 = vsub.f32 %v2379_v27, %v803_v23  ;;  %v2436_v29 = vpop.eup %1990  ;;  %2000 = vpow2.f32 %v850_v18  ;;  %871 = vadd.xlane.f32.xlu1 %v870_v26 }
 0x2f9   :  { %2002 = vpow2.f32 %v852_v20  ;;  %v876_v38 = vsel %vm767_vm2, %v2436_v29, 0.0 }
 0x2fa   :  { %v854_v22 = vmul.f32 1.442695, %v827_v25  ;;  %v2438_v28 = vpop.eup %1992  ;;  %v856_v30 = vmul.f32 1.442695, %v828_v24 }
 0x2fb   :  { %v809_v33 = vpop.xlane.xlu0 %808  ;;  %v812_v34 = vpop.xlane.xlu1 %811  ;;  %v879_v27 = vsel %vm767_vm2, %v2438_v28, 0.0 }
 0x2fc   :  { %v829_v37 = vsub.f32 %v2387_v31, %v809_v33  ;;  %v830_v32 = vsub.f32 %v2397_v36, %v812_v34  ;;  %v2446_v39 = vpop.eup %1994  ;;  %2004 = vpow2.f32 %v854_v22  ;;  %880 = vadd.xlane.f32.xlu0 %v879_v27  ;;  %877 = vadd.xlane.f32.xlu1 %v876_v38 }
 0x2fd   :  { %2006 = vpow2.f32 %v856_v30  ;;  %v882_v47 = vsel %vm767_vm2, %v2446_v39, 0.0 }
 0x2fe   :  { %v858_v40 = vmul.f32 1.442695, %v829_v37  ;;  %v2448_v41 = vpop.eup %1996  ;;  %v860_v42 = vmul.f32 1.442695, %v830_v32 }
 0x2ff   :  { %v815_v43 = vpop.xlane.xlu0 %814  ;;  %v387_v31 = vpop.permute.xlu1 %386  ;;  %v885_v45 = vsel %vm767_vm2, %v2448_v41, 0.0 }
 0x300   :  { %2008 = vpow2.f32 %v858_v40  ;;  %v831_v36 = vsub.f32 %v2395_v35, %v815_v43  ;;  %422 = vst.msk [vmem:[#allocation4 + $0x60] sm:$0xff] %vm49_vm0, %v387_v31  ;;  %v2456_v48 = vpop.eup %1998  ;;  %886 = vadd.xlane.f32.xlu0 %v885_v45  ;;  %883 = vadd.xlane.f32.xlu1 %v882_v47 }
 0x301   :  { %2010 = vpow2.f32 %v860_v42  ;;  %v888_v54 = vsel %vm767_vm2, %v2456_v48, 0.0 }
 0x302   :  { %v862_v50 = vmul.f32 1.442695, %v831_v36  ;;  %v2458_v52 = vpop.eup %2000 }
 0x303   :  { %v389_v53 = vpop.permute.xlu0 %388  ;;  %v891_v35 = vsel %vm767_vm2, %v2458_v52, 0.0  ;;  %v2465_v55 = vpop.eup %2002 }
 0x304   :  { %2012 = vpow2.f32 %v862_v50  ;;  %423 = vst.msk [vmem:[#allocation4 + $0x68] sm:$0xff] %vm49_vm0, %v389_v53  ;;  %892 = vadd.xlane.f32.xlu0 %v891_v35  ;;  %889 = vadd.xlane.f32.xlu1 %v888_v54  ;;  %v894_v58 = vsel %vm767_vm2, %v2465_v55, 0.0 }
 0x306   :  { %v2467_v56 = vpop.eup %2004 }
 0x307   :  { %v897_v57 = vsel %vm767_vm2, %v2467_v56, 0.0  ;;  %v2473_v46 = vpop.eup %2006  ;;  %v988_v20 = vld [vmem:[#allocation4 + $0x60] sm:$0xff] }
 0x308   :  { %898 = vadd.xlane.f32.xlu0 %v897_v57  ;;  %895 = vadd.xlane.f32.xlu1 %v894_v58  ;;  %v900_v44 = vsel %vm767_vm2, %v2473_v46, 0.0 }
 0x30a   :  { %v2475_v59 = vpop.eup %2008 }
 0x30b   :  { %v903_v60 = vsel %vm767_vm2, %v2475_v59, 0.0  ;;  %v2481_v61 = vpop.eup %2010 }
 0x30c   :  { %904 = vadd.xlane.f32.xlu0 %v903_v60  ;;  %901 = vadd.xlane.f32.xlu1 %v900_v44  ;;  %v906_v2 = vsel %vm767_vm2, %v2481_v61, 0.0 }
 0x30e   :  { %v2483_v62 = vpop.eup %2012 }
 0x30f   :  { %v909_v1 = vsel %vm767_vm2, %v2483_v62, 0.0 }
 0x310   :  { %910 = vadd.xlane.f32.xlu0 %v909_v1  ;;  %907 = vadd.xlane.f32.xlu1 %v906_v2 }
 0x321   :  { %390 = vrot.lane.b32.xlu1 %v2251_v51, %s2071_s2 }
 0x326   :  { %392 = vrot.lane.b32.xlu0 %v2248_v49, %s2071_s2 }
 0x37c   :  { %v869_v3 = vpop.xlane.xlu0 %868 }
 0x37d   :  { %2014 = vrcp.f32 %v869_v3  ;;  %v866_v4 = vpop.xlane.xlu1 %865 }
 0x37e   :  { %2016 = vrcp.f32 %v866_v4 }
 0x381   :  { %v875_v5 = vpop.xlane.xlu0 %874 }
 0x382   :  { %2018 = vrcp.f32 %v875_v5 }
 0x385   :  { %v872_v6 = vpop.xlane.xlu1 %871 }
 0x386   :  { %2020 = vrcp.f32 %v872_v6 }
 0x387   :  { %v2015_v7 = vpop.eup %2014 }
 0x388   :  { %v2017_v8 = vpop.eup %2016  ;;  %v945_v11 = vmul.f32 %v2015_v7, %v2414_v63  ;;  %v989_v63 = vld [vmem:[#allocation4 + $0x68] sm:$0xff] }
 0x389   :  { %v944_v12 = vmul.f32 %v2017_v8, %v2416_v0  ;;  %v881_v51 = vpop.xlane.xlu0 %880  ;;  %v878_v49 = vpop.xlane.xlu1 %877  ;;  %v1969_v21 = vpack.c.bf16 %v989_v63, %v988_v20 }
 0x38a   :  { %961 = vst.msk [vmem:[#allocation6 + $0x8] sm:$0xff] %vm767_vm2, %v945_v11  ;;  %2022 = vrcp.f32 %v881_v51 }
 0x38b   :  { %960 = vst.msk [vmem:[#allocation6] sm:$0xff] %vm767_vm2, %v944_v12  ;;  %1831 = vmatprep.mubr.msk.f32.mxu0 %vm767_vm2, %v944_v12  ;;  %2024 = vrcp.f32 %v878_v49 }
 0x38c   :  { %v2019_v15 = vpop.eup %2018  ;;  %1832 = vmatmul.mubr.msk.f32.vlgmr.msra.gmra.mrb[24].mxu0 %vm767_vm2, %v945_v11 }
 0x38d   :  { %1964 = vmatpush3.bf16.msra.mxu0 %v2360_v9  ;;  %v947_v0 = vmul.f32 %v2019_v15, %v2424_v10  ;;  %v887_v17 = vpop.xlane.xlu0 %886  ;;  %v884_v18 = vpop.xlane.xlu1 %883 }
 0x38e   :  { %1966 = vmatprep.subr.bf16.mxu0 %v1965_v16  ;;  %2026 = vrcp.f32 %v887_v17 }
 0x38f   :  { %963 = vst.msk [vmem:[#allocation6 + $0x18] sm:$0xff] %vm767_vm2, %v947_v0  ;;  %2028 = vrcp.f32 %v884_v18 }
 0x390   :  { %v2021_v23 = vpop.eup %2020 }
 0x391   :  { %1968 = vmatpush3.bf16.msra.mxu0 %v1965_v16  ;;  %v893_v24 = vpop.xlane.xlu0 %892  ;;  %v890_v25 = vpop.xlane.xlu1 %889  ;;  %v946_v26 = vmul.f32 %v2021_v23, %v2430_v19 }
 0x392   :  { %1970 = vmatprep.subr.bf16.mxu0 %v1969_v21  ;;  %2030 = vrcp.f32 %v893_v24 }
 0x393   :  { %2032 = vrcp.f32 %v890_v25  ;;  %962 = vst.msk [vmem:[#allocation6 + $0x10] sm:$0xff] %vm767_vm2, %v946_v26  ;;  %1834 = vmatprep.mubr.msk.f32.mxu0 %vm767_vm2, %v946_v26 }
 0x394   :  { %v2023_v9 = vpop.eup %2022  ;;  %1835 = vmatmul.mubr.msk.f32.gmra.mrb[26].mxu0 %vm767_vm2, %v947_v0 }
 0x395   :  { %v2025_v10 = vpop.eup %2024  ;;  %1972 = vmatpush3.bf16.msra.mxu0 %v1969_v21  ;;  %v899_v22 = vpop.xlane.xlu0 %898  ;;  %v949_v33 = vmul.f32 %v2023_v9, %v2438_v28 }
 0x396   :  { %v896_v30 = vpop.xlane.xlu1 %895  ;;  %2034 = vrcp.f32 %v899_v22  ;;  %v948_v34 = vmul.f32 %v2025_v10, %v2436_v29 }
 0x397   :  { %2036 = vrcp.f32 %v896_v30  ;;  %965 = vst.msk [vmem:[#allocation6 + $0x28] sm:$0xff] %vm767_vm2, %v949_v33 }
 0x398   :  { %v2027_v19 = vpop.eup %2026  ;;  %964 = vst.msk [vmem:[#allocation6 + $0x20] sm:$0xff] %vm767_vm2, %v948_v34  ;;  %1837 = vmatprep.mubr.msk.f32.mxu0 %vm767_vm2, %v948_v34 }
 0x399   :  { %v2029_v37 = vpop.eup %2028  ;;  %1838 = vmatmul.mubr.msk.f32.gmra.mrb[28].mxu0 %vm767_vm2, %v949_v33  ;;  %v905_v32 = vpop.xlane.xlu0 %904  ;;  %v951_v38 = vmul.f32 %v2027_v19, %v2448_v41 }
 0x39a   :  { %v902_v27 = vpop.xlane.xlu1 %901  ;;  %2038 = vrcp.f32 %v905_v32  ;;  %v950_v28 = vmul.f32 %v2029_v37, %v2446_v39 }
 0x39b   :  { %2040 = vrcp.f32 %v902_v27  ;;  %967 = vst.msk [vmem:[#allocation6 + $0x38] sm:$0xff] %vm767_vm2, %v951_v38 }
 0x39c   :  { %v2031_v29 = vpop.eup %2030  ;;  %966 = vst.msk [vmem:[#allocation6 + $0x30] sm:$0xff] %vm767_vm2, %v950_v28  ;;  %1840 = vmatprep.mubr.msk.f32.mxu0 %vm767_vm2, %v950_v28 }
 0x39d   :  { %v2033_v40 = vpop.eup %2032  ;;  %v953_v42 = vmul.f32 %v2031_v29, %v2458_v52  ;;  %1841 = vmatmul.mubr.msk.f32.gmra.mrb[30].mxu0 %vm767_vm2, %v951_v38  ;;  %v911_v43 = vpop.xlane.xlu0 %910 }
 0x39e   :  { %v908_v31 = vpop.xlane.xlu1 %907  ;;  %2042 = vrcp.f32 %v911_v43  ;;  %v952_v41 = vmul.f32 %v2033_v40, %v2456_v48 }
 0x39f   :  { %969 = vst.msk [vmem:[#allocation6 + $0x48] sm:$0xff] %vm767_vm2, %v953_v42  ;;  %2044 = vrcp.f32 %v908_v31 }
 0x3a0   :  { %v2035_v39 = vpop.eup %2034  ;;  %968 = vst.msk [vmem:[#allocation6 + $0x40] sm:$0xff] %vm767_vm2, %v952_v41  ;;  %1859 = vmatprep.mubr.msk.f32.mxu0 %vm767_vm2, %v952_v41 }
 0x3a1   :  { %v2037_v36 = vpop.eup %2036  ;;  %v393_v45 = vpop.permute.xlu0 %392  ;;  %v955_v50 = vmul.f32 %v2035_v39, %v2467_v56 }
 0x3a2   :  { %v391_v47 = vpop.permute.xlu1 %390  ;;  %425 = vst.msk [vmem:[#allocation4 + $0x78] sm:$0xff] %vm49_vm0, %v393_v45  ;;  %v954_v52 = vmul.f32 %v2037_v36, %v2465_v55 }
 0x3a3   :  { %424 = vst.msk [vmem:[#allocation4 + $0x70] sm:$0xff] %vm49_vm0, %v391_v47 }
 0x3a4   :  { %971 = vst.msk [vmem:[#allocation6 + $0x58] sm:$0xff] %vm767_vm2, %v955_v50  ;;  %v2039_v48 = vpop.eup %2038  ;;  %970 = vst.msk [vmem:[#allocation6 + $0x50] sm:$0xff] %vm767_vm2, %v954_v52 }
 0x3a5   :  { %v2041_v53 = vpop.eup %2040  ;;  %v957_v35 = vmul.f32 %v2039_v48, %v2475_v59 }
 0x3a6   :  { %v956_v54 = vmul.f32 %v2041_v53, %v2473_v46  ;;  %v1250_v46 = vld [vmem:[%s2732_s3] sm:$0xff]  ;;  %s2072_s3 = smov [#allocation6]  }
 0x3a7   :  { %973 = vst.msk [vmem:[#allocation6 + $0x68] sm:$0xff] %vm767_vm2, %v957_v35  ;;  %1871 = vmatprep.subr.mxu1 %v1250_v46  ;;  %s1540_s15 = sshll.u32 %s2072_s3, 4  ;;  %s1541_s15 = int_to_ptr.vmem [resolvable:$true] %s1540_s15 }
 0x3a8   :  { %v2043_v57 = vpop.eup %2042  ;;  %972 = vst.msk [vmem:[#allocation6 + $0x60] sm:$0xff] %vm767_vm2, %v956_v54  ;;  %1872 = vmatpush3.msra.mxu1 %v1250_v46  ;;  %s2046_s16 = scalar_lea.vmem %s1541_s15, 2048  ;;  %p2051_p1 = scmp.lt.s32.totalorder %s1541_s15, %s1541_s15 }
 0x3a9   :  { %v2045_v56 = vpop.eup %2044  ;;  %v991_v60 = vld [vmem:[#allocation4 + $0x78] sm:$0xff]  ;;  %v959_v55 = vmul.f32 %v2043_v57, %v2483_v62  ;;  %p2047_p0 = scmp.ne.s32.totalorder %s1541_s15, %s2046_s16  ;;  %p2052_p2 = scmp.lt.s32.totalorder %s2046_s16, %s2046_s16 }
 0x3aa   :  { %v990_v58 = vld [vmem:[#allocation4 + $0x70] sm:$0xff]  ;;  %v958_v1 = vmul.f32 %v2045_v56, %v2481_v61 }
 0x3ab   :  { %v1973_v44 = vpack.c.bf16 %v991_v60, %v990_v58  ;;  %975 = vst.msk [vmem:[#allocation6 + $0x78] sm:$0xff] %vm767_vm2, %v959_v55  ;;  %p2053_p3 = por %p2052_p2, %p2051_p1 }
 0x3ac   :  { %974 = vst.msk [vmem:[#allocation6 + $0x70] sm:$0xff] %vm767_vm2, %v958_v1 }
 0x3ad   :  { %1974 = vmatprep.subr.bf16.mxu0 %v1973_v44  ;;  %p2054_p4 = pnand %p2053_p3, %p2047_p0 }
 0x3ae   :  { %1976 = vmatpush3.bf16.msra.mxu0 %v1973_v44 }
 0x3b1   :  { %1860 = vmatmul.mubr.msk.f32.vlgmr.msra.gmra.mrb[32].mxu0 %vm767_vm2, %v953_v42 }
 0x3b2   :  { %1862 = vmatprep.mubr.msk.f32.mxu0 %vm767_vm2, %v954_v52 }
 0x3b5   :  { %1863 = vmatmul.mubr.msk.f32.gmra.mrb[34].mxu0 %vm767_vm2, %v955_v50 }
 0x3b6   :  { %1865 = vmatprep.mubr.msk.f32.mxu0 %vm767_vm2, %v956_v54 }
 0x3b9   :  { %1866 = vmatmul.mubr.msk.f32.gmra.mrb[36].mxu0 %vm767_vm2, %v957_v35 }
 0x3ba   :  { %1868 = vmatprep.mubr.msk.f32.mxu0 %vm767_vm2, %v958_v1 }
 0x3bd   :  { %1869 = vmatmul.mubr.msk.f32.gmra.mrb[38].mxu0 %vm767_vm2, %v959_v55 }
 0x45f   :  { %v1833_v59 = vpop.f32.mrb[24].mxu0 }
 0x460   :  { %v1082_v61 = vpop.f32.mrb[25].mxu0 }
 0x461   :  { %1873 = vmatprep.mubr.msk.f32.mxu1 %vm49_vm0, %v1082_v61 }
 0x462   :  { %1874 = vmatmul.mubr.msk.f32.vlgmr.msra.gmra.mrb[8].mxu1 %vm49_vm0, %v1833_v59 }
 0x467   :  { %v1836_v62 = vpop.f32.mrb[26].mxu0 }
 0x468   :  { %v1092_v2 = vpop.f32.mrb[27].mxu0 }
 0x469   :  { %1876 = vmatprep.mubr.msk.f32.mxu1 %vm49_vm0, %v1092_v2 }
 0x46a   :  { %1877 = vmatmul.mubr.msk.f32.gmra.mrb[10].mxu1 %vm49_vm0, %v1836_v62 }
 0x46c   :  { %v1839_v3 = vpop.f32.mrb[28].mxu0 }
 0x46d   :  { %v1102_v4 = vpop.f32.mrb[29].mxu0 }
 0x46e   :  { %1879 = vmatprep.mubr.msk.f32.mxu1 %vm49_vm0, %v1102_v4 }
 0x46f   :  { %1880 = vmatmul.mubr.msk.f32.gmra.mrb[12].mxu1 %vm49_vm0, %v1839_v3 }
 0x470   :  { %v1842_v5 = vpop.f32.mrb[30].mxu0 }
 0x471   :  { %v1112_v6 = vpop.f32.mrb[31].mxu0 }
 0x472   :  { %1882 = vmatprep.mubr.msk.f32.mxu1 %vm49_vm0, %v1112_v6 }
 0x473   :  { %1883 = vmatmul.mubr.msk.f32.gmra.mrb[14].mxu1 %vm49_vm0, %v1842_v5 }
 0x484   :  { %v1861_v7 = vpop.f32.mrb[32].mxu0 }
 0x485   :  { %v1211_v8 = vpop.f32.mrb[33].mxu0 }
 0x486   :  { %1885 = vmatprep.mubr.msk.f32.mxu1 %vm49_vm0, %v1211_v8 }
 0x487   :  { %1886 = vmatmul.mubr.msk.f32.gmra.mrb[16].mxu1 %vm49_vm0, %v1861_v7 }
 0x488   :  { %v1864_v11 = vpop.f32.mrb[34].mxu0 }
 0x489   :  { %v1221_v12 = vpop.f32.mrb[35].mxu0 }
 0x48a   :  { %1888 = vmatprep.mubr.msk.f32.mxu1 %vm49_vm0, %v1221_v12 }
 0x48b   :  { %1889 = vmatmul.mubr.msk.f32.gmra.mrb[18].mxu1 %vm49_vm0, %v1864_v11 }
 0x48c   :  { %v1867_v13 = vpop.f32.mrb[36].mxu0 }
 0x48d   :  { %v1231_v14 = vpop.f32.mrb[37].mxu0 }
 0x48e   :  { %1891 = vmatprep.mubr.msk.f32.mxu1 %vm49_vm0, %v1231_v14 }
 0x48f   :  { %1892 = vmatmul.mubr.msk.f32.gmra.mrb[20].mxu1 %vm49_vm0, %v1867_v13 }
 0x490   :  { %v1870_v51 = vpop.f32.mrb[38].mxu0 }
 0x491   :  { %v1241_v49 = vpop.f32.mrb[39].mxu0 }
 0x492   :  { %1894 = vmatprep.mubr.msk.f32.mxu1 %vm49_vm0, %v1241_v49 }
 0x493   :  { %1895 = vmatmul.mubr.msk.f32.gmra.mrb[22].mxu1 %vm49_vm0, %v1870_v51 }
 0x494   :  { %2057 = shalt.err (!%p2054_p4)
}
 0x495   :  { %s2058_s19 = scalar_lea.hbm %s2736_s7, 2048 }
 0x496   :  { %p2059_p5 = scmp.ne.s32.totalorder %s2736_s7, %s2058_s19  ;;  %p2062_p6 = scmp.lt.u32.totalorder %s2058_s19, %s2736_s7 }
 0x498   :  { %p2064_p7 = pnand %p2062_p6, %p2059_p5 }
 0x49a   :  { %2067 = shalt.err (!%p2064_p7)
}
 0x49b   :  { %s2073_s24 = smov 128   ;;  %s2074_s25 = smov 8   ;;  %v2578_v15 = vld [vmem:[%s2733_s4] ss:$0 sm:$0xff]  ;;  %v2583_v63 = vstv %s2734_s5  ;;  %v1469_v18 = vld [vmem:[%s2729_s0 + $0x8] sm:$0xff]  ;;  %v1471_v30 = vld [vmem:[%s2729_s0 + $0x18] sm:$0xff] }
 0x49c   :  { %1546 = dma.vmem_to_hbm [thread:$0]  %s1541_s15, 2048, %s2736_s7, [#allocation7], %s2073_s24, %s2073_s24, %s2074_s25  }
 0x49d   :  { %v1468_v23 = vld [vmem:[%s2729_s0] sm:$0xff]  ;;  %v1470_v19 = vld [vmem:[%s2729_s0 + $0x10] sm:$0xff]  ;;  %v1473_v40 = vld [vmem:[%s2729_s0 + $0x28] sm:$0xff] }
 0x49e   :  { %v1472_v31 = vld [vmem:[%s2729_s0 + $0x20] sm:$0xff]  ;;  %v1475_v52 = vld [vmem:[%s2729_s0 + $0x38] sm:$0xff]  ;;  %v1474_v35 = vld [vmem:[%s2729_s0 + $0x30] sm:$0xff] }
 0x49f   :  { %v1477_v44 = vld [vmem:[%s2729_s0 + $0x48] sm:$0xff]  ;;  %v1476_v59 = vld [vmem:[%s2729_s0 + $0x40] sm:$0xff]  ;;  %v1479_v6 = vld [vmem:[%s2729_s0 + $0x58] sm:$0xff] }
 0x4a0   :  { %v1478_v11 = vld [vmem:[%s2729_s0 + $0x50] sm:$0xff] }
 0x535   :  { %v1875_v16 = vpop.f32.mrb[8].mxu1 }
 0x536   :  { %v1452_v0 = vadd.f32 %v1875_v16, %v2578_v15  ;;  %v1365_v17 = vpop.f32.mrb[9].mxu1 }
 0x537   :  { %v1451_v20 = vadd.f32 %v2578_v15, %v1365_v17 }
 0x538   :  { %v1486_v21 = vmul.f32 %v2583_v63, %v1452_v0  ;;  %v1481_v0 = vld [vmem:[%s2729_s0 + $0x68] sm:$0xff] }
 0x539   :  { %v1485_v24 = vmul.f32 %v2583_v63, %v1451_v20  ;;  %v1480_v20 = vld [vmem:[%s2729_s0 + $0x60] sm:$0xff] }
 0x53a   :  { %v1502_v25 = vadd.f32 %v1486_v21, %v1469_v18 }
 0x53b   :  { %v1501_v26 = vadd.f32 %v1485_v24, %v1468_v23 }
 0x53c   :  { %1518 = vst.msk [vmem:[%s2735_s6 + $0x8] sm:$0xff] %vm49_vm0, %v1502_v25 }
 0x53d   :  { %1517 = vst.msk [vmem:[%s2735_s6] sm:$0xff] %vm49_vm0, %v1501_v26  ;;  %v1878_v9 = vpop.f32.mrb[10].mxu1 }
 0x53e   :  { %v1454_v10 = vadd.f32 %v1878_v9, %v2578_v15  ;;  %v1375_v22 = vpop.f32.mrb[11].mxu1 }
 0x53f   :  { %v1453_v33 = vadd.f32 %v2578_v15, %v1375_v22 }
 0x540   :  { %v1488_v34 = vmul.f32 %v2583_v63, %v1454_v10  ;;  %v1483_v10 = vld [vmem:[%s2729_s0 + $0x78] sm:$0xff] }
 0x541   :  { %v1487_v37 = vmul.f32 %v2583_v63, %v1453_v33  ;;  %v1482_v33 = vld [vmem:[%s2729_s0 + $0x70] sm:$0xff] }
 0x542   :  { %v1504_v32 = vadd.f32 %v1488_v34, %v1471_v30  ;;  %v1881_v27 = vpop.f32.mrb[12].mxu1 }
 0x543   :  { %v1503_v38 = vadd.f32 %v1487_v37, %v1470_v19  ;;  %v1456_v28 = vadd.f32 %v1881_v27, %v2578_v15  ;;  %v1385_v29 = vpop.f32.mrb[13].mxu1 }
 0x544   :  { %1520 = vst.msk [vmem:[%s2735_s6 + $0x18] sm:$0xff] %vm49_vm0, %v1504_v32  ;;  %v1455_v42 = vadd.f32 %v2578_v15, %v1385_v29 }
 0x545   :  { %1519 = vst.msk [vmem:[%s2735_s6 + $0x10] sm:$0xff] %vm49_vm0, %v1503_v38  ;;  %v1490_v43 = vmul.f32 %v2583_v63, %v1456_v28 }
 0x546   :  { %v1489_v41 = vmul.f32 %v2583_v63, %v1455_v42  ;;  %v1884_v39 = vpop.f32.mrb[14].mxu1 }
 0x547   :  { %v1506_v36 = vadd.f32 %v1490_v43, %v1473_v40  ;;  %v1458_v45 = vadd.f32 %v1884_v39, %v2578_v15  ;;  %v1395_v47 = vpop.f32.mrb[15].mxu1 }
 0x548   :  { %v1505_v50 = vadd.f32 %v1489_v41, %v1472_v31  ;;  %v1457_v48 = vadd.f32 %v2578_v15, %v1395_v47 }
 0x549   :  { %1522 = vst.msk [vmem:[%s2735_s6 + $0x28] sm:$0xff] %vm49_vm0, %v1506_v36  ;;  %v1492_v53 = vmul.f32 %v2583_v63, %v1458_v45 }
 0x54a   :  { %1521 = vst.msk [vmem:[%s2735_s6 + $0x20] sm:$0xff] %vm49_vm0, %v1505_v50  ;;  %v1491_v54 = vmul.f32 %v2583_v63, %v1457_v48 }
 0x54b   :  { %v1508_v57 = vadd.f32 %v1492_v53, %v1475_v52 }
 0x54c   :  { %v1507_v56 = vadd.f32 %v1491_v54, %v1474_v35 }
 0x54d   :  { %1524 = vst.msk [vmem:[%s2735_s6 + $0x38] sm:$0xff] %vm49_vm0, %v1508_v57 }
 0x54e   :  { %1523 = vst.msk [vmem:[%s2735_s6 + $0x30] sm:$0xff] %vm49_vm0, %v1507_v56 }
 0x55a   :  { %v1887_v58 = vpop.f32.mrb[16].mxu1 }
 0x55b   :  { %v1460_v60 = vadd.f32 %v1887_v58, %v2578_v15  ;;  %v1405_v55 = vpop.f32.mrb[17].mxu1 }
 0x55c   :  { %v1459_v1 = vadd.f32 %v2578_v15, %v1405_v55 }
 0x55d   :  { %v1494_v46 = vmul.f32 %v2583_v63, %v1460_v60 }
 0x55e   :  { %v1493_v61 = vmul.f32 %v2583_v63, %v1459_v1  ;;  %v1890_v62 = vpop.f32.mrb[18].mxu1 }
 0x55f   :  { %v1510_v2 = vadd.f32 %v1494_v46, %v1477_v44  ;;  %v1462_v3 = vadd.f32 %v1890_v62, %v2578_v15  ;;  %v1415_v4 = vpop.f32.mrb[19].mxu1 }
 0x560   :  { %v1509_v5 = vadd.f32 %v1493_v61, %v1476_v59  ;;  %v1461_v7 = vadd.f32 %v2578_v15, %v1415_v4 }
 0x561   :  { %1526 = vst.msk [vmem:[%s2735_s6 + $0x48] sm:$0xff] %vm49_vm0, %v1510_v2  ;;  %v1496_v8 = vmul.f32 %v2583_v63, %v1462_v3 }
 0x562   :  { %1525 = vst.msk [vmem:[%s2735_s6 + $0x40] sm:$0xff] %vm49_vm0, %v1509_v5  ;;  %v1495_v12 = vmul.f32 %v2583_v63, %v1461_v7  ;;  %v1893_v13 = vpop.f32.mrb[20].mxu1 }
 0x563   :  { %v1512_v14 = vadd.f32 %v1496_v8, %v1479_v6  ;;  %v1464_v51 = vadd.f32 %v1893_v13, %v2578_v15  ;;  %v1425_v49 = vpop.f32.mrb[21].mxu1 }
 0x564   :  { %v1511_v16 = vadd.f32 %v1495_v12, %v1478_v11  ;;  %v1463_v17 = vadd.f32 %v2578_v15, %v1425_v49 }
 0x565   :  { %1528 = vst.msk [vmem:[%s2735_s6 + $0x58] sm:$0xff] %vm49_vm0, %v1512_v14  ;;  %v1498_v18 = vmul.f32 %v2583_v63, %v1464_v51 }
 0x566   :  { %1527 = vst.msk [vmem:[%s2735_s6 + $0x50] sm:$0xff] %vm49_vm0, %v1511_v16  ;;  %v1497_v21 = vmul.f32 %v2583_v63, %v1463_v17  ;;  %v1896_v23 = vpop.f32.mrb[22].mxu1 }
 0x567   :  { %v1514_v24 = vadd.f32 %v1498_v18, %v1481_v0  ;;  %v1466_v25 = vadd.f32 %v1896_v23, %v2578_v15  ;;  %v1435_v26 = vpop.f32.mrb[23].mxu1 }
 0x568   :  { %v1513_v9 = vadd.f32 %v1497_v21, %v1480_v20  ;;  %v1465_v22 = vadd.f32 %v2578_v15, %v1435_v26 }
 0x569   :  { %1530 = vst.msk [vmem:[%s2735_s6 + $0x68] sm:$0xff] %vm49_vm0, %v1514_v24  ;;  %v1500_v30 = vmul.f32 %v2583_v63, %v1466_v25 }
 0x56a   :  { %1529 = vst.msk [vmem:[%s2735_s6 + $0x60] sm:$0xff] %vm49_vm0, %v1513_v9  ;;  %v1499_v34 = vmul.f32 %v2583_v63, %v1465_v22 }
 0x56b   :  { %v1516_v19 = vadd.f32 %v1500_v30, %v1483_v10 }
 0x56c   :  { %v1515_v15 = vadd.f32 %v1499_v34, %v1482_v33 }
 0x56d   :  { %1532 = vst.msk [vmem:[%s2735_s6 + $0x78] sm:$0xff] %vm49_vm0, %v1516_v19 }
 0x56e   :  { %1531 = vst.msk [vmem:[%s2735_s6 + $0x70] sm:$0xff] %vm49_vm0, %v1515_v15 }
 0x56f   :  { %2068 = dma.done.wait [#allocation7], 2048  }
 0x570   :  { %2069 = vsyncadd [#allocation7], 4294965248 }
 0x571   :  { %1552 = vsyncpa [#allocation7], 1 }

</bundles_post_ra>
